<compile_context>
chip_gen: v5e
topology: v5e:2x2
jax: 0.10.0
libtpu: 0.0.40
codegen_flags: <defaults>
</compile_context>

<pallas_src>
import functools

import jax
import jax.numpy as jnp
from jax.experimental import pallas as pl
from jax.experimental.pallas import tpu as pltpu


# --------------------------------------------------------------------------
# Kernels
# --------------------------------------------------------------------------

def _bn_stats_kernel(x_ref, gamma_ref, beta_ref,
                     mean_ref, var_ref, scale_ref, shift_ref,
                     sum_ref, sumsq_ref,
                     *, eps, count, reduce_axis, n_grid):
    """Accumulate per-channel sum / sumsq across all grid steps; finalize stats.

    x_ref       : (TN, C)          [2-D layout]  or (1, C, TL)   [NCHW layout]
    gamma/beta  : (1, C)                         or (1, C, 1)
    outputs     : mean, var, scale(=gamma*inv_std), shift(=beta-mean*scale)
    scratch     : sum_ref, sumsq_ref  (same shape as the stats, resident f32)
    """
    first = pl.program_id(0) == 0
    last = pl.program_id(0) == pl.num_programs(0) - 1
    for ax in range(1, n_grid):
        first = jnp.logical_and(first, pl.program_id(ax) == 0)
        last = jnp.logical_and(last, pl.program_id(ax) == pl.num_programs(ax) - 1)

    @pl.when(first)
    def _():
        sum_ref[...] = jnp.zeros_like(sum_ref)
        sumsq_ref[...] = jnp.zeros_like(sumsq_ref)

    x = x_ref[...].astype(jnp.float32)
    sum_ref[...] += jnp.sum(x, axis=reduce_axis, keepdims=True)
    sumsq_ref[...] += jnp.sum(x * x, axis=reduce_axis, keepdims=True)

    @pl.when(last)
    def _():
        inv_n = jnp.float32(1.0 / count)
        mean = sum_ref[...] * inv_n
        # Biased variance (matches the reference module); f32 accumulation
        # keeps E[x^2]-mean^2 accurate enough, clamp guards tiny negatives.
        var = jnp.maximum(sumsq_ref[...] * inv_n - mean * mean, 0.0)
        inv_std = jax.lax.rsqrt(var + jnp.float32(eps))  # EUP (free slot)
        scale = gamma_ref[...] * inv_std
        shift = beta_ref[...] - mean * scale
        mean_ref[...] = mean
        var_ref[...] = var
        scale_ref[...] = scale
        shift_ref[...] = shift


def _bn_norm_kernel(x_ref, scale_ref, shift_ref, y_ref):
    """y = x * scale + shift (scale/shift precomputed per channel)."""
    x = x_ref[...].astype(jnp.float32)
    y_ref[...] = (x * scale_ref[...] + shift_ref[...]).astype(y_ref.dtype)


# --------------------------------------------------------------------------
# Tiling / layout helpers
# --------------------------------------------------------------------------

def _pick_tile(n, align, cap):
    """Largest tile t: either t == n (<= cap), or t % align == 0, n % t == 0, t <= cap."""
    if n <= cap:
        return n
    t = (cap // align) * align
    while t >= align:
        if n % t == 0:
            return t
        t -= align
    return n  # fall back to whole axis (rare, e.g. prime-ish sizes)


# ~2 MiB of f32 per x block => double-buffered x-in + y-out <= 8 MiB, which
# fits the smallest default scoped-VMEM limit (v5e: 16 MiB, v7x: 32 MiB).
_MAX_BLOCK_ELEMS = 1 << 19


def _layout_2d(n, c, max_block_elems):
    """(N, C): channels on lanes, tile the reduction axis N (sublanes)."""
    tn = _pick_tile(n, 8, max(8, max_block_elems // max(c, 1)))
    grid = (n // tn,)
    x_spec = pl.BlockSpec((tn, c), lambda i: (i, 0))
    stat_spec = pl.BlockSpec((1, c), lambda i: (0, 0))
    return grid, x_spec, stat_spec, (1, c), (0,)


def _layout_nchw(b, c, l, max_block_elems):
    """(B, C, H*W): channels on sublanes, spatial on lanes (no NCHW transpose)."""
    tl = _pick_tile(l, 128, max(128, max_block_elems // max(c, 1)))
    grid = (b, l // tl)
    x_spec = pl.BlockSpec((1, c, tl), lambda bb, ll: (bb, 0, ll))
    stat_spec = pl.BlockSpec((1, c, 1), lambda bb, ll: (0, 0, 0))
    return grid, x_spec, stat_spec, (1, c, 1), (0, 2)


# --------------------------------------------------------------------------
# pallas_call wrappers
# --------------------------------------------------------------------------

def _bn_stats(x_nd, gamma_nd, beta_nd, *, eps, count, grid, x_spec, stat_spec,
              stat_shape, reduce_axis):
    kernel = functools.partial(
        _bn_stats_kernel, eps=float(eps), count=int(count),
        reduce_axis=reduce_axis, n_grid=len(grid))
    stat_sds = jax.ShapeDtypeStruct(stat_shape, jnp.float32)
    return pl.pallas_call(
        kernel,
        out_shape=(stat_sds, stat_sds, stat_sds, stat_sds),
        grid=grid,
        in_specs=[x_spec, stat_spec, stat_spec],
        out_specs=(stat_spec, stat_spec, stat_spec, stat_spec),
        scratch_shapes=[pltpu.VMEM(stat_shape, jnp.float32),
                        pltpu.VMEM(stat_shape, jnp.float32)],
        compiler_params=pltpu.CompilerParams(
            dimension_semantics=("arbitrary",) * len(grid)),
    )(x_nd, gamma_nd, beta_nd)


def _bn_normalize(x_nd, scale, shift, *, grid, x_spec, stat_spec):
    return pl.pallas_call(
        _bn_norm_kernel,
        out_shape=jax.ShapeDtypeStruct(x_nd.shape, x_nd.dtype),
        grid=grid,
        in_specs=[x_spec, stat_spec, stat_spec],
        out_specs=x_spec,
        compiler_params=pltpu.CompilerParams(
            dimension_semantics=("parallel",) * len(grid)),  # shards across TCs on v7x
    )(x_nd, scale, shift)


# --------------------------------------------------------------------------
# Module
# --------------------------------------------------------------------------

class BatchNormPallas:
    """JAX/Pallas port of the PyTorch BatchNorm module."""

    def __init__(self, num_features, num_dims, eps=1e-5, momentum=0.9,
                 max_block_elems=_MAX_BLOCK_ELEMS):
        assert num_dims in (2, 4)
        shape = (1, num_features) if num_dims == 2 else (1, num_features, 1, 1)
        self.num_dims = num_dims
        self.num_features = num_features
        self.eps = eps
        self.momentum = momentum
        self._max_block_elems = max_block_elems
        self.gamma = jnp.ones(shape, dtype=jnp.float32)
        self.beta = jnp.zeros(shape, dtype=jnp.float32)
        self.running_mean = jnp.zeros(shape, dtype=jnp.float32)
        self.running_var = jnp.ones(shape, dtype=jnp.float32)

    def __call__(self, x, training=True):
        assert x.ndim in (2, 4)
        c = self.num_features
        if x.ndim == 2:
            n, cc = x.shape
            assert cc == c
            grid, x_spec, stat_spec, stat_shape, red = _layout_2d(
                n, c, self._max_block_elems)
            x_nd = x
            count = n
        else:
            b, cc, h, w = x.shape
            assert cc == c
            l = h * w
            grid, x_spec, stat_spec, stat_shape, red = _layout_nchw(
                b, c, l, self._max_block_elems)
            x_nd = x.reshape(b, c, l)  # free view of NCHW; no transpose
            count = b * l

        gamma_nd = self.gamma.reshape(stat_shape).astype(jnp.float32)
        beta_nd = self.beta.reshape(stat_shape).astype(jnp.float32)

        if training:
            mean, var, scale, shift = _bn_stats(
                x_nd, gamma_nd, beta_nd, eps=self.eps, count=count, grid=grid,
                x_spec=x_spec, stat_spec=stat_spec, stat_shape=stat_shape,
                reduce_axis=red)
            # Running-stat EMA (module side effect), matching the reference:
            # running = momentum*running + (1-momentum)*batch, biased variance.
            m = self.momentum
            self.running_mean = (m * self.running_mean
                                 + (1.0 - m) * mean.reshape(self.running_mean.shape))
            self.running_var = (m * self.running_var
                                + (1.0 - m) * var.reshape(self.running_var.shape))
        else:
            # No-grad path: normalize with running statistics (tiny (1,C) math).
            rm = self.running_mean.reshape(stat_shape).astype(jnp.float32)
            rv = self.running_var.reshape(stat_shape).astype(jnp.float32)
            scale = gamma_nd * jax.lax.rsqrt(rv + jnp.float32(self.eps))
            shift = beta_nd - rm * scale

        y_nd = _bn_normalize(x_nd, scale, shift, grid=grid,
                             x_spec=x_spec, stat_spec=stat_spec)
        return y_nd.reshape(x.shape)


# --------------------------------------------------------------------------
# Reference + test
# --------------------------------------------------------------------------

def _reference(x, gamma, beta, eps):
    if x.ndim == 2:
        mean = x.mean(axis=0)
        var = ((x - mean) ** 2).mean(axis=0)
    else:
        mean = x.mean(axis=(0, 2, 3), keepdims=True)
        var = ((x - mean) ** 2).mean(axis=(0, 2, 3), keepdims=True)
    x_hat = (x - mean) / jnp.sqrt(var + eps)
    return gamma * x_hat + beta


if __name__ == "__main__":
    key = jax.random.PRNGKey(0)
    k4, k2 = jax.random.split(key)

    # 4-D case: NCHW, batch=2, channels=4, spatial=16x16.
    x4 = jax.random.normal(k4, (2, 4, 16, 16), dtype=jnp.float32)
    bn4 = BatchNormPallas(num_features=4, num_dims=4)
    y4 = jax.block_until_ready(bn4(x4))
    ref4 = _reference(x4, bn4.gamma, bn4.beta, bn4.eps)
    assert y4.shape == x4.shape
    assert jnp.allclose(y4, ref4, atol=1e-4, rtol=1e-4)

    # 2-D case: (batch=8, features=32).
    x2 = jax.random.normal(k2, (8, 32), dtype=jnp.float32)
    bn2 = BatchNormPallas(num_features=32, num_dims=2)
    y2 = jax.block_until_ready(bn2(x2))
    ref2 = _reference(x2, bn2.gamma, bn2.beta, bn2.eps)
    assert y2.shape == x2.shape
    assert jnp.allclose(y2, ref2, atol=1e-4, rtol=1e-4)

    # Inference path (running statistics), matches the module's no-grad branch.
    y2_eval = jax.block_until_ready(bn2(x2, training=False))
    ref2_eval = (bn2.gamma * (x2 - bn2.running_mean)
                 / jnp.sqrt(bn2.running_var + bn2.eps) + bn2.beta)
    assert jnp.allclose(y2_eval, ref2_eval, atol=1e-4, rtol=1e-4)

    print("KERNEL_OK")
</pallas_src>

<mosaic_0001>
module attributes {stable_mosaic.version = 11 : i64} {
  func.func @_bn_stats_kernel(%arg0: i32, %arg1: i32, %arg2: memref<1x4x256xf32, #tpu.memory_space<vmem>>, %arg3: memref<1x4x1xf32, #tpu.memory_space<vmem>>, %arg4: memref<1x4x1xf32, #tpu.memory_space<vmem>>, %arg5: memref<1x4x1xf32, #tpu.memory_space<vmem>>, %arg6: memref<1x4x1xf32, #tpu.memory_space<vmem>>, %arg7: memref<1x4x1xf32, #tpu.memory_space<vmem>>, %arg8: memref<1x4x1xf32, #tpu.memory_space<vmem>>, %arg9: memref<1x4x1xf32, #tpu.memory_space<vmem>>, %arg10: memref<1x4x1xf32, #tpu.memory_space<vmem>>) attributes {dimension_semantics = [#tpu.dimension_semantics<arbitrary>, #tpu.dimension_semantics<arbitrary>], iteration_bounds = array<i64: 2, 1>, scalar_prefetch = 0 : i64, scratch_operands = 2 : i64, tpu.core_type = #tpu.core_type<tc>, window_params = [{transform_indices = @transform_0, window_bounds = array<i64: 1, 4, 256>}, {pipeline_mode = #tpu.pipeline_mode<synchronous>, transform_indices = @transform_1, window_bounds = array<i64: 1, 4, 1>}, {pipeline_mode = #tpu.pipeline_mode<synchronous>, transform_indices = @transform_2, window_bounds = array<i64: 1, 4, 1>}, {pipeline_mode = #tpu.pipeline_mode<synchronous>, transform_indices = @transform_3, window_bounds = array<i64: 1, 4, 1>}, {pipeline_mode = #tpu.pipeline_mode<synchronous>, transform_indices = @transform_4, window_bounds = array<i64: 1, 4, 1>}, {pipeline_mode = #tpu.pipeline_mode<synchronous>, transform_indices = @transform_5, window_bounds = array<i64: 1, 4, 1>}, {pipeline_mode = #tpu.pipeline_mode<synchronous>, transform_indices = @transform_6, window_bounds = array<i64: 1, 4, 1>}]} {
    %c0_i32 = arith.constant 0 : i32
    %0 = arith.cmpi eq, %arg0, %c0_i32 : i32
    %c1_i32 = arith.constant 1 : i32
    %1 = arith.cmpi eq, %arg0, %c1_i32 : i32
    %c0_i32_0 = arith.constant 0 : i32
    %2 = arith.cmpi eq, %arg1, %c0_i32_0 : i32
    %3 = arith.andi %0, %2 : i1
    %c0_i32_1 = arith.constant 0 : i32
    %4 = arith.cmpi eq, %arg1, %c0_i32_1 : i32
    %5 = arith.andi %1, %4 : i1
    %6 = arith.extui %3 : i1 to i32
    %c0_i32_2 = arith.constant 0 : i32
    %7 = arith.cmpi ne, %6, %c0_i32_2 : i32
    scf.if %7 {
      %cst_19 = arith.constant 0.000000e+00 : f32
      %22 = vector.broadcast %cst_19 : f32 to vector<1x4x1xf32>
      %c0_20 = arith.constant 0 : index
      %c0_21 = arith.constant 0 : index
      %c0_22 = arith.constant 0 : index
      %23 = vector.load %arg9[%c0_20, %c0_21, %c0_22] : memref<1x4x1xf32, #tpu.memory_space<vmem>>, vector<1x4x1xf32>
      tpu.vector_store %arg9[%c0_20, %c0_21, %c0_22], %22 {strides = array<i32>} : memref<1x4x1xf32, #tpu.memory_space<vmem>>, vector<1x4x1xf32>,
      %cst_23 = arith.constant 0.000000e+00 : f32
      %24 = vector.broadcast %cst_23 : f32 to vector<1x4x1xf32>
      %c0_24 = arith.constant 0 : index
      %c0_25 = arith.constant 0 : index
      %c0_26 = arith.constant 0 : index
      %25 = vector.load %arg10[%c0_24, %c0_25, %c0_26] : memref<1x4x1xf32, #tpu.memory_space<vmem>>, vector<1x4x1xf32>
      tpu.vector_store %arg10[%c0_24, %c0_25, %c0_26], %24 {strides = array<i32>} : memref<1x4x1xf32, #tpu.memory_space<vmem>>, vector<1x4x1xf32>,
    } else {
    }
    %c0 = arith.constant 0 : index
    %c0_3 = arith.constant 0 : index
    %c0_4 = arith.constant 0 : index
    %8 = vector.load %arg2[%c0, %c0_3, %c0_4] : memref<1x4x256xf32, #tpu.memory_space<vmem>>, vector<1x4x256xf32>
    %c0_5 = arith.constant 0 : index
    %c0_6 = arith.constant 0 : index
    %c0_7 = arith.constant 0 : index
    %9 = vector.load %arg9[%c0_5, %c0_6, %c0_7] : memref<1x4x1xf32, #tpu.memory_space<vmem>>, vector<1x4x1xf32>
    %cst = arith.constant dense<0.000000e+00> : vector<4xf32>
    %10 = vector.multi_reduction <add>, %8, %cst [0, 2] : vector<1x4x256xf32> to vector<4xf32>
    %11 = vector.shape_cast %10 : vector<4xf32> to vector<1x4x1xf32>
    %12 = arith.addf %9, %11 : vector<1x4x1xf32>
    %c0_8 = arith.constant 0 : index
    %c0_9 = arith.constant 0 : index
    %c0_10 = arith.constant 0 : index
    %13 = vector.load %arg9[%c0_8, %c0_9, %c0_10] : memref<1x4x1xf32, #tpu.memory_space<vmem>>, vector<1x4x1xf32>
    tpu.vector_store %arg9[%c0_8, %c0_9, %c0_10], %12 {strides = array<i32>} : memref<1x4x1xf32, #tpu.memory_space<vmem>>, vector<1x4x1xf32>,
    %c0_11 = arith.constant 0 : index
    %c0_12 = arith.constant 0 : index
    %c0_13 = arith.constant 0 : index
    %14 = vector.load %arg10[%c0_11, %c0_12, %c0_13] : memref<1x4x1xf32, #tpu.memory_space<vmem>>, vector<1x4x1xf32>
    %15 = arith.mulf %8, %8 : vector<1x4x256xf32>
    %cst_14 = arith.constant dense<0.000000e+00> : vector<4xf32>
    %16 = vector.multi_reduction <add>, %15, %cst_14 [0, 2] : vector<1x4x256xf32> to vector<4xf32>
    %17 = vector.shape_cast %16 : vector<4xf32> to vector<1x4x1xf32>
    %18 = arith.addf %14, %17 : vector<1x4x1xf32>
    %c0_15 = arith.constant 0 : index
    %c0_16 = arith.constant 0 : index
    %c0_17 = arith.constant 0 : index
    %19 = vector.load %arg10[%c0_15, %c0_16, %c0_17] : memref<1x4x1xf32, #tpu.memory_space<vmem>>, vector<1x4x1xf32>
    tpu.vector_store %arg10[%c0_15, %c0_16, %c0_17], %18 {strides = array<i32>} : memref<1x4x1xf32, #tpu.memory_space<vmem>>, vector<1x4x1xf32>,
    %20 = arith.extui %5 : i1 to i32
    %c0_i32_18 = arith.constant 0 : i32
    %21 = arith.cmpi ne, %20, %c0_i32_18 : i32
    scf.if %21 {
      %c0_19 = arith.constant 0 : index
      %c0_20 = arith.constant 0 : index
      %c0_21 = arith.constant 0 : index
      %22 = vector.load %arg9[%c0_19, %c0_20, %c0_21] : memref<1x4x1xf32, #tpu.memory_space<vmem>>, vector<1x4x1xf32>
      %cst_22 = arith.constant 0.001953125 : f32
      %23 = vector.broadcast %cst_22 : f32 to vector<1x4x1xf32>
      %24 = arith.mulf %22, %23 : vector<1x4x1xf32>
      %c0_23 = arith.constant 0 : index
      %c0_24 = arith.constant 0 : index
      %c0_25 = arith.constant 0 : index
      %25 = vector.load %arg10[%c0_23, %c0_24, %c0_25] : memref<1x4x1xf32, #tpu.memory_space<vmem>>, vector<1x4x1xf32>
      %cst_26 = arith.constant 0.001953125 : f32
      %26 = vector.broadcast %cst_26 : f32 to vector<1x4x1xf32>
      %27 = arith.mulf %25, %26 : vector<1x4x1xf32>
      %28 = arith.mulf %24, %24 : vector<1x4x1xf32>
      %29 = arith.subf %27, %28 : vector<1x4x1xf32>
      %cst_27 = arith.constant 0.000000e+00 : f32
      %30 = vector.broadcast %cst_27 : f32 to vector<1x4x1xf32>
      %31 = arith.maximumf %29, %30 : vector<1x4x1xf32>
      %cst_28 = arith.constant 9.99999974E-6 : f32
      %32 = vector.broadcast %cst_28 : f32 to vector<1x4x1xf32>
      %33 = arith.addf %31, %32 : vector<1x4x1xf32>
      %34 = math.rsqrt %33 : vector<1x4x1xf32>
      %c0_29 = arith.constant 0 : index
      %c0_30 = arith.constant 0 : index
      %c0_31 = arith.constant 0 : index
      %35 = vector.load %arg3[%c0_29, %c0_30, %c0_31] : memref<1x4x1xf32, #tpu.memory_space<vmem>>, vector<1x4x1xf32>
      %36 = arith.mulf %35, %34 : vector<1x4x1xf32>
      %c0_32 = arith.constant 0 : index
      %c0_33 = arith.constant 0 : index
      %c0_34 = arith.constant 0 : index
      %37 = vector.load %arg4[%c0_32, %c0_33, %c0_34] : memref<1x4x1xf32, #tpu.memory_space<vmem>>, vector<1x4x1xf32>
      %38 = arith.mulf %24, %36 : vector<1x4x1xf32>
      %39 = arith.subf %37, %38 : vector<1x4x1xf32>
      %c0_35 = arith.constant 0 : index
      %c0_36 = arith.constant 0 : index
      %c0_37 = arith.constant 0 : index
      %40 = vector.load %arg5[%c0_35, %c0_36, %c0_37] : memref<1x4x1xf32, #tpu.memory_space<vmem>>, vector<1x4x1xf32>
      tpu.vector_store %arg5[%c0_35, %c0_36, %c0_37], %24 {strides = array<i32>} : memref<1x4x1xf32, #tpu.memory_space<vmem>>, vector<1x4x1xf32>,
      %c0_38 = arith.constant 0 : index
      %c0_39 = arith.constant 0 : index
      %c0_40 = arith.constant 0 : index
      %41 = vector.load %arg6[%c0_38, %c0_39, %c0_40] : memref<1x4x1xf32, #tpu.memory_space<vmem>>, vector<1x4x1xf32>
      tpu.vector_store %arg6[%c0_38, %c0_39, %c0_40], %31 {strides = array<i32>} : memref<1x4x1xf32, #tpu.memory_space<vmem>>, vector<1x4x1xf32>,
      %c0_41 = arith.constant 0 : index
      %c0_42 = arith.constant 0 : index
      %c0_43 = arith.constant 0 : index
      %42 = vector.load %arg7[%c0_41, %c0_42, %c0_43] : memref<1x4x1xf32, #tpu.memory_space<vmem>>, vector<1x4x1xf32>
      tpu.vector_store %arg7[%c0_41, %c0_42, %c0_43], %36 {strides = array<i32>} : memref<1x4x1xf32, #tpu.memory_space<vmem>>, vector<1x4x1xf32>,
      %c0_44 = arith.constant 0 : index
      %c0_45 = arith.constant 0 : index
      %c0_46 = arith.constant 0 : index
      %43 = vector.load %arg8[%c0_44, %c0_45, %c0_46] : memref<1x4x1xf32, #tpu.memory_space<vmem>>, vector<1x4x1xf32>
      tpu.vector_store %arg8[%c0_44, %c0_45, %c0_46], %39 {strides = array<i32>} : memref<1x4x1xf32, #tpu.memory_space<vmem>>, vector<1x4x1xf32>,
    } else {
    }
    return
  }
  func.func @transform_0(%arg0: i32, %arg1: i32) -> (i32, i32, i32) {
    %c0_i32 = arith.constant 0 : i32
    %c0_i32_0 = arith.constant 0 : i32
    return %arg0, %c0_i32, %arg1 : i32, i32, i32
  }
  func.func @transform_1(%arg0: i32, %arg1: i32) -> (i32, i32, i32) {
    %c0_i32 = arith.constant 0 : i32
    %c0_i32_0 = arith.constant 0 : i32
    %c0_i32_1 = arith.constant 0 : i32
    %c0_i32_2 = arith.constant 0 : i32
    return %c0_i32, %c0_i32_0, %c0_i32_1 : i32, i32, i32
  }
  func.func @transform_2(%arg0: i32, %arg1: i32) -> (i32, i32, i32) {
    %c0_i32 = arith.constant 0 : i32
    %c0_i32_0 = arith.constant 0 : i32
    %c0_i32_1 = arith.constant 0 : i32
    %c0_i32_2 = arith.constant 0 : i32
    return %c0_i32, %c0_i32_0, %c0_i32_1 : i32, i32, i32
  }
  func.func @transform_3(%arg0: i32, %arg1: i32) -> (i32, i32, i32) {
    %c0_i32 = arith.constant 0 : i32
    %c0_i32_0 = arith.constant 0 : i32
    %c0_i32_1 = arith.constant 0 : i32
    %c0_i32_2 = arith.constant 0 : i32
    return %c0_i32, %c0_i32_0, %c0_i32_1 : i32, i32, i32
  }
  func.func @transform_4(%arg0: i32, %arg1: i32) -> (i32, i32, i32) {
    %c0_i32 = arith.constant 0 : i32
    %c0_i32_0 = arith.constant 0 : i32
    %c0_i32_1 = arith.constant 0 : i32
    %c0_i32_2 = arith.constant 0 : i32
    return %c0_i32, %c0_i32_0, %c0_i32_1 : i32, i32, i32
  }
  func.func @transform_5(%arg0: i32, %arg1: i32) -> (i32, i32, i32) {
    %c0_i32 = arith.constant 0 : i32
    %c0_i32_0 = arith.constant 0 : i32
    %c0_i32_1 = arith.constant 0 : i32
    %c0_i32_2 = arith.constant 0 : i32
    return %c0_i32, %c0_i32_0, %c0_i32_1 : i32, i32, i32
  }
  func.func @transform_6(%arg0: i32, %arg1: i32) -> (i32, i32, i32) {
    %c0_i32 = arith.constant 0 : i32
    %c0_i32_0 = arith.constant 0 : i32
    %c0_i32_1 = arith.constant 0 : i32
    %c0_i32_2 = arith.constant 0 : i32
    return %c0_i32, %c0_i32_0, %c0_i32_1 : i32, i32, i32
  }
}

</mosaic_0001>

<bundles_post_ra>
// kernel: tpu_custom_call.1
= control target key start
LH: loop header
LB: loop body
LE: loop exit
PB: predicated region body
PF: predicated region fallthrough
CT: control target
= control target key end

     0   :  { %12 = vsyncpa [#allocation5], 0  ;;  %s710_s0 = inlined_call_operand.hbm [shape: f32[2,4,256], index: 0, kind: input, shape index: {}]   ;;  %s711_s1 = inlined_call_operand.vmem [shape: f32[1,4,1], index: 1, kind: input, shape index: {}]   ;;  %s712_s2 = inlined_call_operand.vmem [shape: f32[1,4,1], index: 2, kind: input, shape index: {}]   ;;  %s713_s3 = inlined_call_operand.vmem [shape: f32[1,4,1], index: 3, kind: output, shape index: {0}]   ;;  %s714_s4 = inlined_call_operand.vmem [shape: f32[1,4,1], index: 4, kind: output, shape index: {1}]   ;;  %s715_s5 = inlined_call_operand.vmem [shape: f32[1,4,1], index: 5, kind: output, shape index: {2}]   ;;  %s716_s6 = inlined_call_operand.vmem [shape: f32[1,4,1], index: 6, kind: output, shape index: {3}]  }
   0x1   :  { %14 = vsyncpa [#allocation5 + $0x1], 0  ;;  %s599_s21 = smov 0   ;;  %s601_s22 = smov 0  }
   0x2   :  { %s603_s23 = smov 0   ;;  %s605_s24 = smov 0  }
   0x3   :  { %s607_s25 = smov 0   ;;  %s609_s26 = smov 0  }
   0x4 LB: > { %s408_s27 = sadd.s32 4294967295, %s561_s26   ;;  %s32_s28 = sadd.s32 1, %s557_s25  ;;  %s561_s26 = sphi %s609_s26, %s20_s26   ;;  %s557_s25 = sphi %s607_s25, %s723_s25   ;;  %s553_s24 = sphi %s605_s24, %s722_s24   ;;  %s549_s23 = sphi %s603_s23, %s721_s23   ;;  %s545_s22 = sphi %s601_s22, %s720_s22   ;;  %s541_s21 = sphi %s599_s21, %s719_s21  }
   0x5   : > { %p34_p0 = scmp.ge.s32.totalorder %s32_s28, 2  ;;  %s41_s29 = sadd.s32 1, %s549_s23 }
   0x6   : > { %p48_p1 = scmp.ne.s32.totalorder %s549_s23, %s545_s22  ;;  %p49_p2 = scmp.eq.s32.totalorder %s561_s26, 0 }
   0x7   : > { %s725_s28 = smov (%p34_p0, %s32_s28), 0  ;;  %p54_p4 = scmp.ne.s32.totalorder %s545_s22, %s541_s21 }
   0x8   : > { %p635_p3 = por %p49_p2, %p48_p1  ;;  %s36_s7 = ssub.s32 %s557_s25, %s725_s28 }
   0x9   : > { %p55_p5 = scmp.eq.s32.totalorder %s408_s27, 0  ;;  %p39_p6 = scmp.eq.s32.totalorder %s36_s7, 0 }
   0xa   : > { %p429_p8 = scmp.lt.s32.totalorder %s561_s26, 2  ;;  %s210_s10 = sand.u32 1, %s549_s23  }
   0xb   : > { %p642_p7 = por %p55_p5, %p54_p4  ;;  %s420_s11 = sshll.u32 %s557_s25, 3 }
   0xc   : > { %s648_s9 = scalar_select %p39_p6, %s549_s23, %s41_s29  }
   0xd   : > { %s411_s12 = sshll.u32 %s210_s10, 3  ;;  %s221_s15 = scalar_lea.hbm %s710_s0, %s420_s11 }
   0xe   : > { %s223_s16 = sshll.u32 %s221_s15, 4  ;;  %s214_s17 = scalar_lea.vmem [#allocation4], %s411_s12  ;;  %s224_s16 = int_to_ptr.hbm [resolvable:$true] %s223_s16 }
   0xf   : > { %s225_s18 = sshll.u32 %s214_s17, 4  ;;  %p426_p9 = pnand %p429_p8, %p635_p3  ;;  %s226_s18 = int_to_ptr.vmem [resolvable:$true] %s225_s18 }
  0x10   : > { %p414_p10 = scmp.ge.s32.totalorder %s561_s26, 1  ;;  %p230_p11 = scmp.lt.s32.totalorder %s561_s26, 3 }
  0x11   : > { %s211_s19 = scalar_lea.sflag [#allocation5], %s210_s10 }
  0x12   : > { %428 = dma.hbm_to_vmem [thread:$0]  (!%p426_p9), %s224_s16, 128, %s226_s18, %s211_s19  }
  0x13   : > { %p231_p12 = pnand %p414_p10, %p230_p11 }
  0x14   : > { %s236_s20 = sand.u32 (!%p231_p12), 1, %s545_s22  }
  0x15   : > { %234 = sbr.rel (%p231_p12) target bundleno = 213 (0xd5), region = 32  ;;  %s415_s21 = sshll.u32 (!%p231_p12), %s236_s20, 3 }
  0x16   : > { %s237_s27 = scalar_lea.sflag (!%p231_p12), [#allocation5], %s236_s20  ;;  %s240_s29 = scalar_lea.vmem (!%p231_p12), [#allocation4], %s415_s21 }
  0x1a   : > { %536 = dma.done.wait (%p642_p7), %s237_s27, 128  }
  0x1b   : > { %538 = vsyncadd (%p642_p7), %s237_s27, 4294967168  ;;  %p266_p13 = scmp.eq.s32.totalorder %s553_s24, 0  ;;  %p267_p0 = scmp.eq.s32.totalorder %s553_s24, 1 }
  0x1c   : > { %vm275_vm0 = vcmask (%p266_p13), 3072   ;;  %v563_v0 = vmov (%p266_p13), 0.0  }
  0x1d   : > { %274 = sbr.rel (!%p266_p13) target bundleno = 34 (0x22), region = 40  ;;  %276 = vst.msk [vmem:[#allocation2] sm:$0xf] (%p266_p13), %vm275_vm0, %v563_v0 }
  0x1e   : > { %277 = vst.msk [vmem:[#allocation3] sm:$0xf] (%p266_p13), %vm275_vm0, %v563_v0 }
  0x22 PF: > { %v278_v1 = vld [vmem:[%s240_s29] sm:$0xff]  ;;  %vm286_vm1 = vcmask 1043456   ;;  %vm293_vm2 = vcmask 3072   ;;  %v330_v33 = vld [vmem:[%s711_s1] sm:$0xf] (%p267_p0) }
  0x23   : > { %281 = vst [vmem:[#allocation1] ss:$2 sm:$0xff] %v278_v1  ;;  %v296_v2 = vmul.f32 %v278_v1, %v278_v1  ;;  %v332_v36 = vld [vmem:[%s712_s2] sm:$0xf] (%p267_p0) }
  0x24   : > { %v279_v13 = vld [vmem:[#allocation2] sm:$0xf] }
  0x25   : > { %v295_v16 = vld [vmem:[#allocation3] sm:$0xf] }
  0x2a   : > { %v282_v3 = vld.sshfl [vmem:[#allocation1] sm:$0xff pattern:$0x75316420]  ;;  %v283_v4 = vld.sshfl [vmem:[#allocation1 + $0x8] sm:$0xff pattern:$0x75316420] }
  0x2b   : > { %v287_v5 = vsel %vm286_vm1, %v282_v3, 0.0  ;;  %v288_v6 = vsel %vm286_vm1, %v283_v4, 0.0  ;;  %298 = vst [vmem:[#allocation1] ss:$2 sm:$0xff] %v296_v2 }
  0x2c   : > { %v289_v7 = vadd.f32 %v288_v6, %v287_v5 }
  0x2e   : > { %290 = vadd.xlane.f32.xlu0 %v289_v7 }
  0x32   : > { %v299_v8 = vld.sshfl [vmem:[#allocation1] sm:$0xff pattern:$0x75316420]  ;;  %v300_v9 = vld.sshfl [vmem:[#allocation1 + $0x8] sm:$0xff pattern:$0x75316420] }
  0x33   : > { %v303_v10 = vsel %vm286_vm1, %v299_v8, 0.0  ;;  %v304_v11 = vsel %vm286_vm1, %v300_v9, 0.0 }
  0x34   : > { %v305_v12 = vadd.f32 %v304_v11, %v303_v10 }
  0x36   : > { %306 = vadd.xlane.f32.xlu0 %v305_v12 }
  0xa1   : > { %v291_v14 = vpop.xlane.xlu0 %290 }
  0xa2   : > { %v292_v15 = vadd.f32 %v291_v14, %v279_v13 }
  0xa4   : > { %294 = vst.msk [vmem:[#allocation2] sm:$0xf] %vm293_vm2, %v292_v15 }
  0xa8   : > { %311 = sbr.rel (!%p267_p0) target bundleno = 213 (0xd5), region = 44 }
  0xa9   : > { %v307_v17 = vpop.xlane.xlu0 %306 }
  0xaa   : > { %v308_v18 = vadd.f32 %v307_v17, %v295_v16 }
  0xab   : > { %v312_v19 = vld [vmem:[#allocation2] sm:$0xf] (%p267_p0) }
  0xac   : > { %309 = vst.msk [vmem:[#allocation3] sm:$0xf] %vm293_vm2, %v308_v18  ;;  %v313_v21 = vmul.f32 (%p267_p0), 0.001953125, %v312_v19 }
  0xae   : > { %335 = vst.msk [vmem:[%s713_s3] sm:$0xf] %vm293_vm2, %v313_v21  ;;  %v316_v23 = vmul.f32 %v313_v21, %v313_v21 }
  0xb3   : > { %v314_v20 = vld [vmem:[#allocation3] sm:$0xf] }
  0xb4   : > { %v315_v22 = vmul.f32 0.001953125, %v314_v20 }
  0xb6   : > { %v317_v24 = vsub.f32 %v315_v22, %v316_v23 }
  0xb8   : > { %v318_v25 = vmax.f32 %v317_v24, 0.0 }
  0xba   : > { %v319_v26 = vadd.f32 1e-05, %v318_v25  ;;  %336 = vst.msk [vmem:[%s714_s4] sm:$0xf] %vm293_vm2, %v318_v25 }
  0xbc   : > { %479 = vrsqrt.f32 %v319_v26  ;;  %vm326_vm3 = vweird.f32 %v319_v26 }
  0xc2   : > { %v480_v27 = vpop.eup %479 }
  0xc3   : > { %v321_v28 = vmul.f32 %v480_v27, %v319_v26  ;;  %vm327_vm4 = vweird.f32 %v480_v27 }
  0xc4   : > { %vm328_vm5 = vmor %vm326_vm3, %vm327_vm4 }
  0xc5   : > { %v322_v29 = vmul.f32 %v480_v27, %v321_v28 }
  0xc7   : > { %v323_v30 = vmul.f32 0.5, %v322_v29 }
  0xc9   : > { %v324_v31 = vsub.f32 1.5, %v323_v30 }
  0xcb   : > { %v325_v32 = vmul.f32 %v480_v27, %v324_v31 }
  0xcd   : > { %v329_v34 = vsel %vm328_vm5, %v480_v27, %v325_v32 }
  0xce   : > { %v331_v35 = vmul.f32 %v330_v33, %v329_v34 }
  0xd0   : > { %337 = vst.msk [vmem:[%s715_s5] sm:$0xf] %vm293_vm2, %v331_v35  ;;  %v333_v37 = vmul.f32 %v331_v35, %v313_v21 }
  0xd2   : > { %v334_v38 = vsub.f32 %v332_v36, %v333_v37 }
  0xd4   : > { %338 = vst.msk [vmem:[%s716_s6] sm:$0xf] %vm293_vm2, %v334_v38 }
  0xd5 PF: > { %s20_s26 = sadd.s32 1, %s561_s26   ;;  %s719_s21 = smov %s545_s22 }
  0xd6   : > { %p17_p1 = scmp.ge.s32.totalorder %s20_s26, 4   ;;  %s720_s22 = smov %s549_s23 }
  0xd7   : > { %s721_s23 = smov %s648_s9  ;;  %s722_s24 = smov %s557_s25 }
  0xd8   : > { %s723_s25 = smov %s725_s28  ;;  %19 = sbr.rel (!%p17_p1) target bundleno = 4 (0x4), region = 100 }
  0xdd   :  { %368 = vsyncpa [#allocation5], 1 }
  0xde   :  { %370 = vsyncpa [#allocation5 + $0x1], 1 }

</bundles_post_ra>
